<compile_context>
chip_gen: v6e
topology: v6e:2x2x1
jax: 0.10.0
libtpu: 0.0.40
codegen_flags: <defaults>
</compile_context>

<pallas_src>
import functools

import jax
import jax.numpy as jnp
from jax.experimental import pallas as pl
from jax.experimental.pallas import tpu as pltpu


def _round_up(x, m):
    return ((x + m - 1) // m) * m


def _double_q_kernel(state_ref, action_ref,
                     w1s_ref, w1a_ref, b1_ref,
                     w2a_ref, b2a_ref, w2b_ref, b2b_ref,
                     w3_ref, b3_ref,
                     out_ref):
    """min(qf1(sa), qf2(sa)) for one batch tile; both nets fused at layers 1 & 3."""
    cdt = w1s_ref.dtype                      # compute dtype (f32 or bf16)
    H = w2a_ref.shape[0]                     # hidden dim (static)

    s = state_ref[...].astype(cdt)
    a = action_ref[...].astype(cdt)

    # Layer 1: fused concat (split-W1 two-dot sum) + fused dual-network (2H wide).
    h1 = jnp.dot(s, w1s_ref[...], preferred_element_type=jnp.float32)
    h1 = h1 + jnp.dot(a, w1a_ref[...], preferred_element_type=jnp.float32)
    h1 = jnp.maximum(h1 + b1_ref[...], 0.0)                       # (TB, 2H) f32

    # Layer 2: per-network (H, H) matmuls, f32 accumulate, ReLU in f32.
    h2a = jnp.dot(h1[:, :H].astype(cdt), w2a_ref[...],
                  preferred_element_type=jnp.float32)
    h2a = jnp.maximum(h2a + b2a_ref[...], 0.0)                    # (TB, H)
    h2b = jnp.dot(h1[:, H:].astype(cdt), w2b_ref[...],
                  preferred_element_type=jnp.float32)
    h2b = jnp.maximum(h2b + b2b_ref[...], 0.0)                    # (TB, H)

    # Layer 3: fused block-diagonal head (2H, 2) -> both q's in one MXU pass.
    h2 = jnp.concatenate([h2a.astype(cdt), h2b.astype(cdt)], axis=-1)  # (TB, 2H)
    q = jnp.dot(h2, w3_ref[...], preferred_element_type=jnp.float32) + b3_ref[...]

    out_ref[...] = jnp.minimum(q[:, 0:1], q[:, 1:2]).astype(out_ref.dtype)


def pack_double_q_params(params, state_dim, compute_dtype=jnp.float32):
    """Fuse/repack per-network params for the kernel. Biases stay f32."""
    (w1a, b1a, w2a, b2a, w3a, b3a), (w1b, b1b, w2b, b2b, w3b, b3b) = params
    H = w2a.shape[0]

    w1cat = jnp.concatenate([w1a, w1b], axis=1)                  # (in_dim, 2H)
    w1_state = w1cat[:state_dim].astype(compute_dtype)           # (state_dim, 2H)
    w1_action = w1cat[state_dim:].astype(compute_dtype)          # (action_dim, 2H)
    b1cat = jnp.concatenate([b1a, b1b], axis=1).astype(jnp.float32)   # (1, 2H)

    w3cat = jnp.zeros((2 * H, 2), jnp.float32)
    w3cat = w3cat.at[:H, 0:1].set(w3a)
    w3cat = w3cat.at[H:, 1:2].set(w3b)
    b3cat = jnp.concatenate([b3a, b3b], axis=1).astype(jnp.float32)   # (1, 2)

    return (w1_state, w1_action, b1cat,
            w2a.astype(compute_dtype), b2a.astype(jnp.float32),
            w2b.astype(compute_dtype), b2b.astype(jnp.float32),
            w3cat.astype(compute_dtype), b3cat)


@functools.partial(jax.jit, static_argnames=("tile_b", "compute_dtype"))
def double_q_forward(state, action, params, *, tile_b=1024,
                     compute_dtype=jnp.float32):
    """params = (qf1_params, qf2_params), each (w1, b1, w2, b2, w3, b3)."""
    state = jnp.asarray(state, jnp.float32)
    action = jnp.asarray(action, jnp.float32)
    B, state_dim = state.shape
    action_dim = action.shape[1]

    packed = pack_double_q_params(params, state_dim, compute_dtype)

    # Batch tile: multiple of 8 sublanes, capped by tile_b (sized for v7x VMEM).
    TB = min(_round_up(tile_b, 8), _round_up(B, 8))
    B_pad = _round_up(B, TB)
    if B_pad != B:
        pad = B_pad - B
        state = jnp.pad(state, ((0, pad), (0, 0)))
        action = jnp.pad(action, ((0, pad), (0, 0)))

    grid = (B_pad // TB,)

    act_specs = [
        pl.BlockSpec((TB, state_dim), lambda i: (i, 0)),
        pl.BlockSpec((TB, action_dim), lambda i: (i, 0)),
    ]
    # Full-array blocks + constant index_map -> weights stay resident in VMEM.
    weight_specs = [pl.BlockSpec(p.shape, lambda i: (0, 0)) for p in packed]

    out = pl.pallas_call(
        _double_q_kernel,
        out_shape=jax.ShapeDtypeStruct((B_pad, 1), jnp.float32),
        grid=grid,
        in_specs=act_specs + weight_specs,
        out_specs=pl.BlockSpec((TB, 1), lambda i: (i, 0)),
        compiler_params=pltpu.CompilerParams(
            dimension_semantics=("parallel",)),
    )(state, action, *packed)

    return out[:B]


def _init_linear(key, fan_in, fan_out):
    """PyTorch nn.Linear default init: U(-1/sqrt(fan_in), 1/sqrt(fan_in))."""
    kw, kb = jax.random.split(key)
    bound = 1.0 / jnp.sqrt(jnp.float32(fan_in))
    w = jax.random.uniform(kw, (fan_in, fan_out), jnp.float32, -bound, bound)
    b = jax.random.uniform(kb, (1, fan_out), jnp.float32, -bound, bound)
    return w, b


def init_double_q_params(key, state_dim, action_dim, hidden_dim=256, n_hidden=2):
    assert n_hidden == 2, "kernel is written for the default n_hidden=2"
    in_dim = state_dim + action_dim
    keys = jax.random.split(key, 6)
    w1a, b1a = _init_linear(keys[0], in_dim, hidden_dim)
    w2a, b2a = _init_linear(keys[1], hidden_dim, hidden_dim)
    w3a, b3a = _init_linear(keys[2], hidden_dim, 1)
    w1b, b1b = _init_linear(keys[3], in_dim, hidden_dim)
    w2b, b2b = _init_linear(keys[4], hidden_dim, hidden_dim)
    w3b, b3b = _init_linear(keys[5], hidden_dim, 1)
    return ((w1a, b1a, w2a, b2a, w3a, b3a),
            (w1b, b1b, w2b, b2b, w3b, b3b))


def _ref_forward(state, action, params):
    sa = jnp.concatenate([state, action], axis=1)

    def mlp(p):
        w1, b1, w2, b2, w3, b3 = p
        h = jnp.maximum(sa @ w1 + b1, 0.0)
        h = jnp.maximum(h @ w2 + b2, 0.0)
        return h @ w3 + b3

    return jnp.minimum(mlp(params[0]), mlp(params[1]))


if __name__ == "__main__":
    key = jax.random.PRNGKey(0)
    k_state, k_action, k_params = jax.random.split(key, 3)

    # Small shapes; odd batch exercises padding, tile_b=8 exercises a 3-step grid.
    batch, state_dim, action_dim, hidden_dim = 21, 12, 20, 32
    state = jax.random.normal(k_state, (batch, state_dim), jnp.float32)
    action = jax.random.normal(k_action, (batch, action_dim), jnp.float32)

    params = init_double_q_params(k_params, state_dim, action_dim, hidden_dim)
    ref = _ref_forward(state, action, params)

    # f32 path (exact semantics of the PyTorch module).
    out = double_q_forward(state, action, params, tile_b=8)
    out = jax.block_until_ready(out)
    assert out.shape == (batch, 1)
    assert jnp.allclose(out, ref, atol=1e-4, rtol=1e-5), "f32 mismatch"

    # bf16 compute path (v6e/v7x throughput option): loose tolerance.
    out_bf16 = double_q_forward(state, action, params, tile_b=8,
                                compute_dtype=jnp.bfloat16)
    out_bf16 = jax.block_until_ready(out_bf16)
    assert jnp.allclose(out_bf16, ref, atol=2e-1, rtol=5e-2), "bf16 mismatch"

    print("KERNEL_OK")
</pallas_src>

<mosaic_0001>
module attributes {stable_mosaic.version = 11 : i64} {
  func.func @_double_q_kernel(%arg0: i32, %arg1: memref<8x12xf32, #tpu.memory_space<vmem>>, %arg2: memref<8x20xf32, #tpu.memory_space<vmem>>, %arg3: memref<12x64xf32, #tpu.memory_space<vmem>>, %arg4: memref<20x64xf32, #tpu.memory_space<vmem>>, %arg5: memref<1x64xf32, #tpu.memory_space<vmem>>, %arg6: memref<32x32xf32, #tpu.memory_space<vmem>>, %arg7: memref<1x32xf32, #tpu.memory_space<vmem>>, %arg8: memref<32x32xf32, #tpu.memory_space<vmem>>, %arg9: memref<1x32xf32, #tpu.memory_space<vmem>>, %arg10: memref<64x2xf32, #tpu.memory_space<vmem>>, %arg11: memref<1x2xf32, #tpu.memory_space<vmem>>, %arg12: memref<8x1xf32, #tpu.memory_space<vmem>>) attributes {dimension_semantics = [#tpu.dimension_semantics<parallel>], iteration_bounds = array<i64: 3>, scalar_prefetch = 0 : i64, scratch_operands = 0 : i64, tpu.core_type = #tpu.core_type<tc>, window_params = [{transform_indices = @transform_0, window_bounds = array<i64: 8, 12>}, {transform_indices = @transform_1, window_bounds = array<i64: 8, 20>}, {pipeline_mode = #tpu.pipeline_mode<synchronous>, transform_indices = @transform_2, window_bounds = array<i64: 12, 64>}, {pipeline_mode = #tpu.pipeline_mode<synchronous>, transform_indices = @transform_3, window_bounds = array<i64: 20, 64>}, {pipeline_mode = #tpu.pipeline_mode<synchronous>, transform_indices = @transform_4, window_bounds = array<i64: 1, 64>}, {pipeline_mode = #tpu.pipeline_mode<synchronous>, transform_indices = @transform_5, window_bounds = array<i64: 32, 32>}, {pipeline_mode = #tpu.pipeline_mode<synchronous>, transform_indices = @transform_6, window_bounds = array<i64: 1, 32>}, {pipeline_mode = #tpu.pipeline_mode<synchronous>, transform_indices = @transform_7, window_bounds = array<i64: 32, 32>}, {pipeline_mode = #tpu.pipeline_mode<synchronous>, transform_indices = @transform_8, window_bounds = array<i64: 1, 32>}, {pipeline_mode = #tpu.pipeline_mode<synchronous>, transform_indices = @transform_9, window_bounds = array<i64: 64, 2>}, {pipeline_mode = #tpu.pipeline_mode<synchronous>, transform_indices = @transform_10, window_bounds = array<i64: 1, 2>}, {transform_indices = @transform_11, window_bounds = array<i64: 8, 1>}]} {
    %c0 = arith.constant 0 : index
    %c0_0 = arith.constant 0 : index
    %0 = vector.load %arg1[%c0, %c0_0] : memref<8x12xf32, #tpu.memory_space<vmem>>, vector<8x12xf32>
    %c0_1 = arith.constant 0 : index
    %c0_2 = arith.constant 0 : index
    %1 = vector.load %arg2[%c0_1, %c0_2] : memref<8x20xf32, #tpu.memory_space<vmem>>, vector<8x20xf32>
    %c0_3 = arith.constant 0 : index
    %c0_4 = arith.constant 0 : index
    %2 = vector.load %arg3[%c0_3, %c0_4] : memref<12x64xf32, #tpu.memory_space<vmem>>, vector<12x64xf32>
    %cst = arith.constant dense<0.000000e+00> : vector<8x64xf32>
    %3 = tpu.matmul %0, %2, %cst {dimension_numbers = #tpu.dot_dimension_numbers<[1], [0], [0], [1], [0, 0, 1, 1], [], []>} : vector<8x12xf32>, vector<12x64xf32>, vector<8x64xf32> -> vector<8x64xf32>
    %c0_5 = arith.constant 0 : index
    %c0_6 = arith.constant 0 : index
    %4 = vector.load %arg4[%c0_5, %c0_6] : memref<20x64xf32, #tpu.memory_space<vmem>>, vector<20x64xf32>
    %cst_7 = arith.constant dense<0.000000e+00> : vector<8x64xf32>
    %5 = tpu.matmul %1, %4, %cst_7 {dimension_numbers = #tpu.dot_dimension_numbers<[1], [0], [0], [1], [0, 0, 1, 1], [], []>} : vector<8x20xf32>, vector<20x64xf32>, vector<8x64xf32> -> vector<8x64xf32>
    %6 = arith.addf %3, %5 : vector<8x64xf32>
    %c0_8 = arith.constant 0 : index
    %c0_9 = arith.constant 0 : index
    %7 = vector.load %arg5[%c0_8, %c0_9] : memref<1x64xf32, #tpu.memory_space<vmem>>, vector<1x64xf32>
    %8 = vector.broadcast %7 : vector<1x64xf32> to vector<8x64xf32>
    %9 = arith.addf %6, %8 : vector<8x64xf32>
    %cst_10 = arith.constant 0.000000e+00 : f32
    %10 = vector.broadcast %cst_10 : f32 to vector<8x64xf32>
    %11 = arith.maximumf %9, %10 : vector<8x64xf32>
    %12 = vector.extract_strided_slice %11 {offsets = [0, 0], sizes = [8, 32], strides = [1, 1]} : vector<8x64xf32> to vector<8x32xf32>
    %c0_11 = arith.constant 0 : index
    %c0_12 = arith.constant 0 : index
    %13 = vector.load %arg6[%c0_11, %c0_12] : memref<32x32xf32, #tpu.memory_space<vmem>>, vector<32x32xf32>
    %cst_13 = arith.constant dense<0.000000e+00> : vector<8x32xf32>
    %14 = tpu.matmul %12, %13, %cst_13 {dimension_numbers = #tpu.dot_dimension_numbers<[1], [0], [0], [1], [0, 0, 1, 1], [], []>} : vector<8x32xf32>, vector<32x32xf32>, vector<8x32xf32> -> vector<8x32xf32>
    %c0_14 = arith.constant 0 : index
    %c0_15 = arith.constant 0 : index
    %15 = vector.load %arg7[%c0_14, %c0_15] : memref<1x32xf32, #tpu.memory_space<vmem>>, vector<1x32xf32>
    %16 = vector.broadcast %15 : vector<1x32xf32> to vector<8x32xf32>
    %17 = arith.addf %14, %16 : vector<8x32xf32>
    %cst_16 = arith.constant 0.000000e+00 : f32
    %18 = vector.broadcast %cst_16 : f32 to vector<8x32xf32>
    %19 = arith.maximumf %17, %18 : vector<8x32xf32>
    %20 = vector.extract_strided_slice %11 {offsets = [0, 32], sizes = [8, 32], strides = [1, 1]} : vector<8x64xf32> to vector<8x32xf32>
    %c0_17 = arith.constant 0 : index
    %c0_18 = arith.constant 0 : index
    %21 = vector.load %arg8[%c0_17, %c0_18] : memref<32x32xf32, #tpu.memory_space<vmem>>, vector<32x32xf32>
    %cst_19 = arith.constant dense<0.000000e+00> : vector<8x32xf32>
    %22 = tpu.matmul %20, %21, %cst_19 {dimension_numbers = #tpu.dot_dimension_numbers<[1], [0], [0], [1], [0, 0, 1, 1], [], []>} : vector<8x32xf32>, vector<32x32xf32>, vector<8x32xf32> -> vector<8x32xf32>
    %c0_20 = arith.constant 0 : index
    %c0_21 = arith.constant 0 : index
    %23 = vector.load %arg9[%c0_20, %c0_21] : memref<1x32xf32, #tpu.memory_space<vmem>>, vector<1x32xf32>
    %24 = vector.broadcast %23 : vector<1x32xf32> to vector<8x32xf32>
    %25 = arith.addf %22, %24 : vector<8x32xf32>
    %cst_22 = arith.constant 0.000000e+00 : f32
    %26 = vector.broadcast %cst_22 : f32 to vector<8x32xf32>
    %27 = arith.maximumf %25, %26 : vector<8x32xf32>
    %28 = tpu.concatenate %19, %27 in 1 : vector<8x32xf32>, vector<8x32xf32> -> vector<8x64xf32>
    %c0_23 = arith.constant 0 : index
    %c0_24 = arith.constant 0 : index
    %29 = vector.load %arg10[%c0_23, %c0_24] : memref<64x2xf32, #tpu.memory_space<vmem>>, vector<64x2xf32>
    %cst_25 = arith.constant dense<0.000000e+00> : vector<8x2xf32>
    %30 = tpu.matmul %28, %29, %cst_25 {dimension_numbers = #tpu.dot_dimension_numbers<[1], [0], [0], [1], [0, 0, 1, 1], [], []>} : vector<8x64xf32>, vector<64x2xf32>, vector<8x2xf32> -> vector<8x2xf32>
    %c0_26 = arith.constant 0 : index
    %c0_27 = arith.constant 0 : index
    %31 = vector.load %arg11[%c0_26, %c0_27] : memref<1x2xf32, #tpu.memory_space<vmem>>, vector<1x2xf32>
    %32 = vector.broadcast %31 : vector<1x2xf32> to vector<8x2xf32>
    %33 = arith.addf %30, %32 : vector<8x2xf32>
    %34 = vector.extract_strided_slice %33 {offsets = [0, 0], sizes = [8, 1], strides = [1, 1]} : vector<8x2xf32> to vector<8x1xf32>
    %35 = vector.extract_strided_slice %33 {offsets = [0, 1], sizes = [8, 1], strides = [1, 1]} : vector<8x2xf32> to vector<8x1xf32>
    %36 = arith.minimumf %34, %35 : vector<8x1xf32>
    %c0_28 = arith.constant 0 : index
    %c0_29 = arith.constant 0 : index
    %37 = vector.load %arg12[%c0_28, %c0_29] : memref<8x1xf32, #tpu.memory_space<vmem>>, vector<8x1xf32>
    tpu.vector_store %arg12[%c0_28, %c0_29], %36 {strides = array<i32>} : memref<8x1xf32, #tpu.memory_space<vmem>>, vector<8x1xf32>,
    return
  }
  func.func @transform_0(%arg0: i32) -> (i32, i32) {
    %c0_i32 = arith.constant 0 : i32
    %c0_i32_0 = arith.constant 0 : i32
    return %arg0, %c0_i32 : i32, i32
  }
  func.func @transform_1(%arg0: i32) -> (i32, i32) {
    %c0_i32 = arith.constant 0 : i32
    %c0_i32_0 = arith.constant 0 : i32
    return %arg0, %c0_i32 : i32, i32
  }
  func.func @transform_2(%arg0: i32) -> (i32, i32) {
    %c0_i32 = arith.constant 0 : i32
    %c0_i32_0 = arith.constant 0 : i32
    %c0_i32_1 = arith.constant 0 : i32
    return %c0_i32, %c0_i32_0 : i32, i32
  }
  func.func @transform_3(%arg0: i32) -> (i32, i32) {
    %c0_i32 = arith.constant 0 : i32
    %c0_i32_0 = arith.constant 0 : i32
    %c0_i32_1 = arith.constant 0 : i32
    return %c0_i32, %c0_i32_0 : i32, i32
  }
  func.func @transform_4(%arg0: i32) -> (i32, i32) {
    %c0_i32 = arith.constant 0 : i32
    %c0_i32_0 = arith.constant 0 : i32
    %c0_i32_1 = arith.constant 0 : i32
    return %c0_i32, %c0_i32_0 : i32, i32
  }
  func.func @transform_5(%arg0: i32) -> (i32, i32) {
    %c0_i32 = arith.constant 0 : i32
    %c0_i32_0 = arith.constant 0 : i32
    %c0_i32_1 = arith.constant 0 : i32
    return %c0_i32, %c0_i32_0 : i32, i32
  }
  func.func @transform_6(%arg0: i32) -> (i32, i32) {
    %c0_i32 = arith.constant 0 : i32
    %c0_i32_0 = arith.constant 0 : i32
    %c0_i32_1 = arith.constant 0 : i32
    return %c0_i32, %c0_i32_0 : i32, i32
  }
  func.func @transform_7(%arg0: i32) -> (i32, i32) {
    %c0_i32 = arith.constant 0 : i32
    %c0_i32_0 = arith.constant 0 : i32
    %c0_i32_1 = arith.constant 0 : i32
    return %c0_i32, %c0_i32_0 : i32, i32
  }
  func.func @transform_8(%arg0: i32) -> (i32, i32) {
    %c0_i32 = arith.constant 0 : i32
    %c0_i32_0 = arith.constant 0 : i32
    %c0_i32_1 = arith.constant 0 : i32
    return %c0_i32, %c0_i32_0 : i32, i32
  }
  func.func @transform_9(%arg0: i32) -> (i32, i32) {
    %c0_i32 = arith.constant 0 : i32
    %c0_i32_0 = arith.constant 0 : i32
    %c0_i32_1 = arith.constant 0 : i32
    return %c0_i32, %c0_i32_0 : i32, i32
  }
  func.func @transform_10(%arg0: i32) -> (i32, i32) {
    %c0_i32 = arith.constant 0 : i32
    %c0_i32_0 = arith.constant 0 : i32
    %c0_i32_1 = arith.constant 0 : i32
    return %c0_i32, %c0_i32_0 : i32, i32
  }
  func.func @transform_11(%arg0: i32) -> (i32, i32) {
    %c0_i32 = arith.constant 0 : i32
    %c0_i32_0 = arith.constant 0 : i32
    return %arg0, %c0_i32 : i32, i32
  }
}

</mosaic_0001>

<bundles_post_ra>
// kernel: double_q_forward.1
= control target key start
LH: loop header
LB: loop body
LE: loop exit
PB: predicated region body
PF: predicated region fallthrough
CT: control target
= control target key end

     0   :  { %s1098_s17 = smov 0   ;;  %s1232_s0 = inlined_call_operand.vmem [shape: f32[24,12], index: 0, kind: input, shape index: {}]   ;;  %s1233_s1 = inlined_call_operand.vmem [shape: f32[24,20], index: 1, kind: input, shape index: {}]   ;;  %s1234_s2 = inlined_call_operand.vmem [shape: f32[12,64], index: 2, kind: input, shape index: {}]   ;;  %s1235_s3 = inlined_call_operand.vmem [shape: f32[20,64], index: 3, kind: input, shape index: {}]   ;;  %s1236_s4 = inlined_call_operand.vmem [shape: f32[1,64], index: 4, kind: input, shape index: {}]   ;;  %s1237_s5 = inlined_call_operand.vmem [shape: f32[32,32], index: 5, kind: input, shape index: {}]   ;;  %s1238_s6 = inlined_call_operand.vmem [shape: f32[1,32], index: 6, kind: input, shape index: {}]   ;;  %s1239_s7 = inlined_call_operand.vmem [shape: f32[32,32], index: 7, kind: input, shape index: {}]   ;;  %s1240_s8 = inlined_call_operand.vmem [shape: f32[1,32], index: 8, kind: input, shape index: {}]   ;;  %s1241_s9 = inlined_call_operand.vmem [shape: f32[64,2], index: 9, kind: input, shape index: {}]   ;;  %s1242_s10 = inlined_call_operand.vmem [shape: f32[1,2], index: 10, kind: input, shape index: {}]   ;;  %s1243_s11 = inlined_call_operand.vmem [shape: f32[24,1], index: 11, kind: output, shape index: {}]  }
   0x1 LB: > { %s908_s18 = sadd.s32 4294967295, %s1031_s17   ;;  %p912_p0 = scmp.ge.s32.totalorder %s1031_s17, 1  ;;  %s1031_s17 = sphi %s1098_s17, %s21_s17  }
   0x2   : > { %p345_p1 = scmp.lt.s32.totalorder %s1031_s17, 4 }
   0x4   : > { %p346_p2 = pnand %p912_p0, %p345_p1 }
   0x5   : > { %p387_p3 = scmp.lt.s32.totalorder (!%p346_p2), %s908_s18, 2  ;;  %s1035_s12 = smov (!%p346_p2), 96  }
   0x6   : > { %349 = sbr.rel (%p346_p2) target bundleno = 959 (0x3bf), region = 64  ;;  %s1036_s21 = smov (!%p346_p2), 32  }
   0x7   : > { %s1037_s26 = smov (!%p346_p2), 127  }
   0xb   : > { %v405_v0 = vld [vmem:[%s1235_s3 + $0x10] sm:$0xf]  ;;  %vm410_vm0 = vcmask 1043456   ;;  %v1033_v1 = vmov 0.0   ;;  %v404_v2 = vld [vmem:[%s1235_s3 + $0x8] sm:$0xff]  ;;  %v401_v4 = vld [vmem:[%s1234_s2] sm:$0xff] }
   0xc   : > { %955 = vmatprep.subr.mxu0 %v1033_v1  ;;  %964 = vmatprep.subr.mxu1 %v1033_v1  ;;  %v402_v3 = vld [vmem:[%s1234_s2 + $0x8] sm:$0xf]  ;;  %v403_v5 = vld [vmem:[%s1235_s3] sm:$0xff]  ;;  %s1245_s18 = smov (!%p387_p3, %s908_s18), 2  ;;  %vm1034_vm1 = vmmov 0   ;;  %vm406_vm2 = vcmask 162816  }
   0xd   : > { %956 = vmatpush3.msk.msra.mxu0 %vm410_vm0, %v405_v0  ;;  %965 = vmatpush3.msk.msra.mxu1 %vm410_vm0, %v402_v3  ;;  %s1128_s29 = sshll.u32 %s1245_s18, 3  ;;  %vm484_vm3 = vcmask 97280   ;;  %v573_v8 = vld [vmem:[%s1237_s5 + $0x18] sm:$0xff]  ;;  %v572_v9 = vld [vmem:[%s1237_s5 + $0x10] sm:$0xff]  ;;  %v571_v10 = vld [vmem:[%s1237_s5 + $0x8] sm:$0xff]  ;;  %vm581_vm4 = vcmask 261120  }
   0xe   : > { %957 = vmatprep.subr.mxu0 %v1033_v1  ;;  %966 = vmatprep.subr.mxu1 %v1033_v1  ;;  %s394_s13 = scalar_lea.vmem %s1233_s1, %s1128_s29  ;;  %s390_s16 = scalar_lea.vmem %s1232_s0, %s1128_s29  ;;  %v570_v11 = vld [vmem:[%s1237_s5] sm:$0xff]  ;;  %v659_v20 = vld [vmem:[%s1239_s7 + $0x18] sm:$0xff]  ;;  %v658_v21 = vld [vmem:[%s1239_s7 + $0x10] sm:$0xff]  ;;  %vm762_vm5 = vcmask 523264   ;;  %vm841_vm6 = vcmask 7168  }
   0xf   : > { %958 = vmatpush3.msra.mxu0 %v404_v2  ;;  %961 = vmatprep.mubr.msk.f32.mxu0 %vm1034_vm1, %v1033_v1  ;;  %v400_v6 = vld [vmem:[%s394_s13] sm:$0xff]  ;;  %v657_v22 = vld [vmem:[%s1239_s7 + $0x8] sm:$0xff]  ;;  %v754_v25 = vld [vmem:[%s1241_s9 + $0x38] sm:$0xff]  ;;  %s398_s30 = scalar_lea.vmem %s1243_s11, %s1128_s29 }
  0x10   : > { %959 = vmatprep.subr.mxu0 %v1033_v1  ;;  %967 = vmatpush3.msra.mxu1 %v401_v4  ;;  %v399_v7 = vld [vmem:[%s390_s16] sm:$0xff]  ;;  %v753_v26 = vld [vmem:[%s1241_s9 + $0x30] sm:$0xff]  ;;  %v752_v27 = vld [vmem:[%s1241_s9 + $0x28] sm:$0xff] }
  0x11   : > { %960 = vmatpush3.msra.mxu0 %v403_v5  ;;  %968 = vmatprep.mubr.msk.f32.mxu1 %vm1034_vm1, %v1033_v1  ;;  %v920_v14 = vld [vmem:[%s1236_s4] ss:$0 sm:$0xff]  ;;  %v750_v29 = vld [vmem:[%s1241_s9 + $0x18] sm:$0xff]  ;;  %v749_v31 = vld [vmem:[%s1241_s9 + $0x10] sm:$0xff] }
  0x12   : > { %971 = vmatprep.subr.mxu0 %v1033_v1  ;;  %993 = vmatprep.subr.mxu1 %v1033_v1  ;;  %v656_v23 = vld [vmem:[%s1239_s7] sm:$0xff]  ;;  %v748_v33 = vld [vmem:[%s1241_s9 + $0x8] sm:$0xff] }
  0x13   : > { %962 = vmatmul.mubr.msk.f32.vlgmr.msra.gmra.mxu0 %vm406_vm2, %v400_v6  ;;  %969 = vmatmul.mubr.msk.f32.vlgmr.msra.gmra.mxu1 %vm484_vm3, %v399_v7  ;;  %v751_v28 = vld [vmem:[%s1241_s9 + $0x20] sm:$0xff] }
  0x14   : > { %979 = vmatprep.mubr.msk.f32.mxu0 %vm1034_vm1, %v1033_v1  ;;  %1009 = vmatprep.mubr.msk.f32.mxu1 %vm1034_vm1, %v1033_v1  ;;  %v747_v34 = vld [vmem:[%s1241_s9] sm:$0xff] }
  0x15   : > { %972 = vmatpush3.msra.mxu0 %v573_v8  ;;  %994 = vmatpush3.msra.mxu1 %v754_v25  ;;  %v923_v35 = vld [vmem:[%s1240_s8] ss:$0 sm:$0xff] }
  0x16   : > { %973 = vmatprep.subr.mxu0 %v1033_v1  ;;  %995 = vmatprep.subr.mxu1 %v1033_v1  ;;  %v921_v40 = vld [vmem:[%s1238_s6] ss:$0 sm:$0xff] }
  0x17   : > { %974 = vmatpush3.msra.mxu0 %v572_v9  ;;  %996 = vmatpush3.msra.mxu1 %v753_v26  ;;  %v925_v45 = vld [vmem:[%s1242_s10] ss:$0 sm:$0xff] }
  0x18   : > { %975 = vmatprep.subr.mxu0 %v1033_v1  ;;  %997 = vmatprep.subr.mxu1 %v1033_v1 }
  0x19   : > { %976 = vmatpush3.msra.mxu0 %v571_v10  ;;  %998 = vmatpush3.msra.mxu1 %v752_v27 }
  0x1a   : > { %977 = vmatprep.subr.mxu0 %v1033_v1  ;;  %999 = vmatprep.subr.mxu1 %v1033_v1 }
  0x1b   : > { %978 = vmatpush3.msra.mxu0 %v570_v11  ;;  %1000 = vmatpush3.msra.mxu1 %v751_v28 }
  0x1c   : > { %982 = vmatprep.subr.mxu0 %v1033_v1  ;;  %1001 = vmatprep.subr.mxu1 %v1033_v1 }
  0x1d   : > { %1002 = vmatpush3.msra.mxu1 %v750_v29 }
  0x1e   : > { %1003 = vmatprep.subr.mxu1 %v1033_v1 }
  0x1f   : > { %1004 = vmatpush3.msra.mxu1 %v749_v31 }
  0x20   : > { %1005 = vmatprep.subr.mxu1 %v1033_v1 }
  0x21   : > { %1006 = vmatpush3.msra.mxu1 %v748_v33 }
  0x22   : > { %1007 = vmatprep.subr.mxu1 %v1033_v1 }
  0x23   : > { %1008 = vmatpush3.msra.mxu1 %v747_v34 }
  0xd3   : > { %v480_v12 = vpop.f32.mrf.mxu0  ;;  %v557_v13 = vpop.f32.mrf.mxu1 }
  0xd4   : > { %v558_v15 = vadd.f32 %v557_v13, %v480_v12 }
  0xd5   : > { %v963_v16 = vpop.f32.mrf.mxu0  ;;  %v970_v17 = vpop.f32.mrf.mxu1 }
  0xd6   : > { %v568_v18 = vadd.f32 %v920_v14, %v558_v15 }
  0xd8   : > { %v569_v19 = vmax.f32 %v568_v18, 0.0 }
  0xda   : > { %667 = vrot.lane.b32.xlu0 %v569_v19, %s1035_s12  ;;  %980 = vmatmul.mubr.msk.f32.vlgmr.msra.gmra.mxu0 %vm581_vm4, %v569_v19 }
  0xdb   : > { %983 = vmatpush3.msra.mxu0 %v659_v20  ;;  %990 = vmatprep.mubr.msk.f32.mxu0 %vm1034_vm1, %v1033_v1 }
  0xdc   : > { %984 = vmatprep.subr.mxu0 %v1033_v1 }
  0xdd   : > { %985 = vmatpush3.msra.mxu0 %v658_v21 }
  0xde   : > { %986 = vmatprep.subr.mxu0 %v1033_v1 }
  0xdf   : > { %987 = vmatpush3.msra.mxu0 %v657_v22 }
  0xe0   : > { %988 = vmatprep.subr.mxu0 %v1033_v1 }
  0xe1   : > { %989 = vmatpush3.msra.mxu0 %v656_v23 }
 0x14c   : > { %v668_v24 = vpop.permute.xlu0 %667 }
 0x14d   : > { %991 = vmatmul.mubr.msk.f32.vlgmr.msra.gmra.mxu0 %vm581_vm4, %v668_v24 }
 0x19a   : > { %v651_v30 = vpop.f32.mrf.mxu0 }
 0x19b   : > { %v652_v41 = vadd.f32 %v921_v40, %v651_v30 }
 0x19c   : > { %v981_v32 = vpop.f32.mrf.mxu0 }
 0x19d   : > { %v655_v42 = vmax.f32 %v652_v41, 0.0 }
 0x20d   : > { %v737_v36 = vpop.f32.mrf.mxu0 }
 0x20e   : > { %v738_v37 = vadd.f32 %v923_v35, %v737_v36 }
 0x20f   : > { %v992_v38 = vpop.f32.mrf.mxu0 }
 0x210   : > { %v741_v39 = vmax.f32 %v738_v37, 0.0 }
 0x212   : > { %743 = vrot.lane.b32.xlu0 %v741_v39, %s1036_s21 }
 0x284   : > { %v744_v43 = vpop.permute.xlu0 %743 }
 0x285   : > { %v746_v44 = vsel %vm581_vm4, %v655_v42, %v744_v43 }
 0x286   : > { %1010 = vmatmul.mubr.msk.f32.vlgmr.msra.gmra.mxu1 %vm762_vm5, %v746_v44 }
 0x346   : > { %v832_v46 = vpop.f32.mrf.mxu1 }
 0x347   : > { %v833_v47 = vadd.f32 %v925_v45, %v832_v46 }
 0x348   : > { %v1011_v48 = vpop.f32.mrf.mxu1 }
 0x349   : > { %837 = vrot.lane.b32.xlu1 %v833_v47, %s1037_s26 }
 0x3bb   : > { %v838_v49 = vpop.permute.xlu1 %837 }
 0x3bc   : > { %v840_v50 = vmin.f32 %v833_v47, %v838_v49 }
 0x3be   : > { %842 = vst.msk [vmem:[%s398_s30] sm:$0xff] %vm841_vm6, %v840_v50 }
 0x3bf PF: > { %s21_s17 = sadd.s32 1, %s1031_s17  }
 0x3c0   : > { %p18_p4 = scmp.ge.s32.totalorder %s21_s17, 5  }
 0x3c2   :  { %20 = sbr.rel (!%p18_p4) target bundleno = 1 (0x1), region = 97 }

</bundles_post_ra>
